<compile_context>
chip_gen: v7x
topology: tpu7x:2x2x1
jax: 0.10.0
libtpu: 0.0.40
codegen_flags: <defaults>
</compile_context>

<pallas_src>
import functools

import jax
import jax.numpy as jnp
from jax.experimental import pallas as pl
from jax.experimental.pallas import tpu as pltpu


# ----------------------------- Pallas kernels -------------------------------

def _conv_stats_kernel(g_ref, w_ref, y_ref, stats_ref):
    """Sparse-conv matmul for one N-tile + packed partial BN statistics.

    g_ref     : [tile_n, K*Cin] bf16   gathered neighbor features (K-major)
    w_ref     : [K*Cin, Cout]   bf16   flattened conv weights (resident)
    y_ref     : [tile_n, Cout]  bf16   conv result (pre-BN)
    stats_ref : [1, 2, Cout]    f32    per-tile (sum, sum-of-squares)
    """
    acc = jnp.dot(g_ref[...], w_ref[...], preferred_element_type=jnp.float32)
    # Padded rows of g_ref are all-zero, so they contribute nothing to either
    # partial sum; no explicit row mask is needed.
    stats_ref[:, 0:1, :] = jnp.sum(acc, axis=0)[None, None, :]
    stats_ref[:, 1:2, :] = jnp.sum(acc * acc, axis=0)[None, None, :]
    y_ref[...] = acc.astype(y_ref.dtype)


def _bn_apply_kernel(add_residual, *refs):
    """Folded BatchNorm affine (+ optional residual) + ReLU, lane-dense layout.

    All row-tensors are the packed [rows/pack, pack*Cout] (=128-lane) view,
    so loads/stores use full vregs / unmasked vst's.
    """
    if add_residual:
        y_ref, scale_ref, bias_ref, res_ref, out_ref = refs
    else:
        y_ref, scale_ref, bias_ref, out_ref = refs
        res_ref = None

    y = y_ref[...].astype(jnp.float32) * scale_ref[...] + bias_ref[...]
    if res_ref is not None:
        y = y + res_ref[...].astype(jnp.float32)
    out_ref[...] = jnp.maximum(y, 0.0).astype(out_ref.dtype)


# ------------------------------ layer wrapper --------------------------------

def _pick_tile_n(n, tile_n, mult):
    """Round tile_n to a multiple of `mult`, capped so the grid has >= 2 tiles
    whenever the point count allows it (feeds both v7x TensorCores)."""
    cap = mult * pl.cdiv(pl.cdiv(n, 2), mult)
    req = mult * pl.cdiv(tile_n, mult)
    return max(mult, min(req, cap))


def sparse_conv_bn_relu(feats, idx, w, gamma, beta, residual=None,
                        out_dtype=jnp.float32, tile_n=512, eps=1e-5):
    """Sparse conv (precomputed kernel map `idx`) + BatchNorm(train)
    [+ residual] + ReLU.

    feats : [N, Cin]
    idx   : [K, N] int32   neighbor row per (offset, point); missing neighbors
                           point at row N of the zero-extended feature table.
    w     : [K, Cin, Cout]
    gamma/beta : [Cout]
    residual   : optional [N, Cout]
    """
    N, Cin = feats.shape
    K, _, Cout = w.shape

    # lane-packing factor for the Cout-wide activations (4 for Cout=32)
    pack = 128 // Cout if (Cout <= 128 and 128 % Cout == 0) else 1
    mult = max(32, 8 * pack)
    tile_n = _pick_tile_n(N, tile_n, mult)
    num_tiles = pl.cdiv(N, tile_n)
    n_pad = num_tiles * tile_n

    # ---- neighbor gather (XLA glue), laid out [N, K*Cin] in bf16 ------------
    # Missing neighbors gather the appended all-zero row -> no where() pass.
    feats_z = jnp.concatenate(
        [feats.astype(jnp.bfloat16), jnp.zeros((1, Cin), jnp.bfloat16)], axis=0)
    g = jnp.take(feats_z, idx, axis=0)                        # [K, N, Cin]
    g2d = jnp.transpose(g, (1, 0, 2)).reshape(N, K * Cin)     # [N, K*Cin]
    if n_pad != N:
        g2d = jnp.pad(g2d, ((0, n_pad - N), (0, 0)))
    w2d = w.reshape(K * Cin, Cout).astype(jnp.bfloat16)

    cparams = pltpu.CompilerParams(
        dimension_semantics=("parallel",),          # split N-tiles across TCs
        vmem_limit_bytes=32 * 1024 * 1024,          # well under v7x's 64 MiB
    )

    # ---- pass 1: conv matmul + per-tile packed BN partial statistics --------
    conv_out, pstats = pl.pallas_call(
        _conv_stats_kernel,
        grid=(num_tiles,),
        in_specs=[pl.BlockSpec((tile_n, K * Cin), lambda i: (i, 0)),
                  pl.BlockSpec((K * Cin, Cout), lambda i: (0, 0))],
        out_specs=(pl.BlockSpec((tile_n, Cout), lambda i: (i, 0)),
                   pl.BlockSpec((1, 2, Cout), lambda i: (i, 0, 0))),
        out_shape=(jax.ShapeDtypeStruct((n_pad, Cout), jnp.bfloat16),
                   jax.ShapeDtypeStruct((num_tiles, 2, Cout), jnp.float32)),
        compiler_params=cparams,
    )(g2d, w2d)

    # ---- global (all-N) training-mode BatchNorm stats, folded affine --------
    total = jnp.sum(pstats[:, 0, :], axis=0)                  # [Cout]
    totalsq = jnp.sum(pstats[:, 1, :], axis=0)                # [Cout]
    mean = total / N
    var = jnp.maximum(totalsq / N - mean * mean, 0.0)         # biased variance
    rstd = jax.lax.rsqrt(var + eps)
    scale = gamma * rstd                                      # [Cout]
    bias = beta - mean * scale                                # [Cout]

    # ---- pass 2: normalize + affine (+ residual) + ReLU, lane-dense ---------
    lane = pack * Cout                                        # 128 when packable
    rows_p = n_pad // pack
    tile_p = tile_n // pack

    y_p = conv_out.reshape(rows_p, lane)                      # contiguous view
    scale_p = jnp.tile(scale, pack).reshape(1, lane).astype(jnp.float32)
    bias_p = jnp.tile(bias, pack).reshape(1, lane).astype(jnp.float32)

    ins = [y_p, scale_p, bias_p]
    in_specs = [pl.BlockSpec((tile_p, lane), lambda i: (i, 0)),
                pl.BlockSpec((1, lane), lambda i: (0, 0)),
                pl.BlockSpec((1, lane), lambda i: (0, 0))]
    if residual is not None:
        res = residual
        if n_pad != N:
            res = jnp.pad(res, ((0, n_pad - N), (0, 0)))
        ins.append(res.reshape(rows_p, lane))
        in_specs.append(pl.BlockSpec((tile_p, lane), lambda i: (i, 0)))

    out_p = pl.pallas_call(
        functools.partial(_bn_apply_kernel, residual is not None),
        grid=(num_tiles,),
        in_specs=in_specs,
        out_specs=pl.BlockSpec((tile_p, lane), lambda i: (i, 0)),
        out_shape=jax.ShapeDtypeStruct((rows_p, lane), out_dtype),
        compiler_params=cparams,
    )(*ins)
    return out_p.reshape(n_pad, Cout)[:N]


# ------------------------------ JAX glue --------------------------------------

def kernel_offsets(dimension, kernel_size=3, dilation=1):
    """All kernel_size**D integer offsets of a hypercubic kernel."""
    r = jnp.arange(kernel_size, dtype=jnp.int32) - (kernel_size // 2)
    grids = jnp.meshgrid(*([r] * dimension), indexing="ij")
    offs = jnp.stack([g.reshape(-1) for g in grids], axis=-1)
    return offs * dilation                                    # [K, D]


def build_kernel_map(coords, offsets):
    """Sort/searchsorted kernel-map build: O((K+1) N log N), no [K,N,N] tensor.

    Returns idx [K, N] int32; entries whose neighbor coordinate does not exist
    point at row N (the zero row appended to the feature table), so the conv
    gathers zeros for them.
    """
    c = coords.astype(jnp.int32)
    o = offsets.astype(jnp.int32)
    n = c.shape[0]

    lo = c.min(axis=0) + o.min(axis=0)                        # [D]
    hi = c.max(axis=0) + o.max(axis=0)                        # [D]
    extent = hi - lo + 1                                      # [D]
    rev_cum = jnp.cumprod(extent[::-1])
    strides = jnp.concatenate(
        [rev_cum[::-1][1:], jnp.ones((1,), jnp.int32)])       # row-major strides
    # TODO(synk): int32 keys silently collide once the coordinate-extent product
    # exceeds 2**31 (~1290 per axis in 3-D); switch to 64-bit keys for large clouds.

    ckeys = jnp.sum((c - lo) * strides, axis=-1)              # [N]
    order = jnp.argsort(ckeys)
    skeys = ckeys[order]

    q = c[None, :, :] + o[:, None, :]                         # [K, N, D]
    qkeys = jnp.sum((q - lo) * strides, axis=-1)              # [K, N]
    pos = jnp.clip(jnp.searchsorted(skeys, qkeys), 0, n - 1)  # [K, N]
    found = skeys[pos] == qkeys
    idx = jnp.where(found, order[pos], n)                     # n -> zero row
    return idx.astype(jnp.int32)


class BasicBlockPallas:
    """JAX/Pallas port of the MinkowskiEngine BasicBlock (stride=1, no downsample)."""

    expansion = 1

    def __init__(self, inplanes, planes, stride=1, dilation=1, downsample=None,
                 bn_momentum=0.1, dimension=-1, *, key):
        assert dimension > 0
        # TODO(synk): strided sparse conv and the `downsample` branch (coordinate
        # subsampling) are not implemented; this block covers stride=1, downsample=None.
        assert stride == 1 and downsample is None
        assert inplanes == planes * self.expansion  # residual add without downsample
        del bn_momentum  # training-mode batch statistics; running stats unused here

        K = 3 ** dimension
        k1, k2 = jax.random.split(key)
        self.w1 = jax.random.normal(k1, (K, inplanes, planes), jnp.float32) * (
            1.0 / jnp.sqrt(jnp.float32(inplanes * K)))
        self.w2 = jax.random.normal(k2, (K, planes, planes), jnp.float32) * (
            1.0 / jnp.sqrt(jnp.float32(planes * K)))
        # deterministic, non-trivial BN affine params
        self.gamma1 = 1.0 + 0.05 * jnp.arange(planes, dtype=jnp.float32)
        self.beta1 = 0.01 * jnp.arange(planes, dtype=jnp.float32)
        self.gamma2 = 1.0 - 0.03 * jnp.arange(planes, dtype=jnp.float32) / planes
        self.beta2 = -0.02 * jnp.arange(planes, dtype=jnp.float32) / planes
        self.dimension = dimension
        self.dilation = dilation

    def __call__(self, feats, coords):
        offs = kernel_offsets(self.dimension, 3, self.dilation)
        # kernel map built once, reused by both convolutions
        idx = build_kernel_map(coords, offs)
        residual = feats
        # conv1 -> norm1 -> relu   (bf16 activation feeding the next bf16 matmul)
        out = sparse_conv_bn_relu(feats, idx, self.w1, self.gamma1, self.beta1,
                                  out_dtype=jnp.bfloat16)
        # conv2 -> norm2 -> (+ residual) -> relu   (final output in f32)
        out = sparse_conv_bn_relu(out, idx, self.w2, self.gamma2, self.beta2,
                                  residual=residual, out_dtype=jnp.float32)
        return out


# -------------------------------- main ---------------------------------------

if __name__ == "__main__":
    key = jax.random.PRNGKey(0)
    k_feat, k_params = jax.random.split(key)

    dimension = 3
    inplanes = planes = 32
    N = 200  # not a multiple of the row tile -> exercises padding + 2-tile grid

    # deterministic coordinates: first N points of a 6x6x6 integer grid
    ax = jnp.arange(6, dtype=jnp.int32)
    gx, gy, gz = jnp.meshgrid(ax, ax, ax, indexing="ij")
    coords = jnp.stack([gx.reshape(-1), gy.reshape(-1), gz.reshape(-1)], -1)[:N]

    feats = jax.random.normal(k_feat, (N, inplanes), jnp.float32)

    block = BasicBlockPallas(inplanes, planes, stride=1, dilation=1,
                             downsample=None, dimension=dimension, key=k_params)

    out = block(feats, coords)
    out = jax.block_until_ready(out)
    assert out.shape == (N, planes) and out.dtype == jnp.float32
    assert bool(jnp.all(jnp.isfinite(out)))
    print("KERNEL_OK")
</pallas_src>

<mosaic_0001>
module attributes {stable_mosaic.version = 11 : i64} {
  func.func @_conv_stats_kernel(%arg0: i32, %arg1: memref<128x864xbf16, #tpu.memory_space<vmem>>, %arg2: memref<864x32xbf16, #tpu.memory_space<vmem>>, %arg3: memref<128x32xbf16, #tpu.memory_space<vmem>>, %arg4: memref<1x2x32xf32, #tpu.memory_space<vmem>>) attributes {dimension_semantics = [#tpu.dimension_semantics<parallel>], iteration_bounds = array<i64: 2>, scalar_prefetch = 0 : i64, scratch_operands = 0 : i64, tpu.core_type = #tpu.core_type<tc>, window_params = [{transform_indices = @transform_0, window_bounds = array<i64: 128, 864>}, {pipeline_mode = #tpu.pipeline_mode<synchronous>, transform_indices = @transform_1, window_bounds = array<i64: 864, 32>}, {transform_indices = @transform_2, window_bounds = array<i64: 128, 32>}, {transform_indices = @transform_3, window_bounds = array<i64: 1, 2, 32>}]} {
    %c0 = arith.constant 0 : index
    %c0_0 = arith.constant 0 : index
    %0 = vector.load %arg1[%c0, %c0_0] : memref<128x864xbf16, #tpu.memory_space<vmem>>, vector<128x864xbf16>
    %c0_1 = arith.constant 0 : index
    %c0_2 = arith.constant 0 : index
    %1 = vector.load %arg2[%c0_1, %c0_2] : memref<864x32xbf16, #tpu.memory_space<vmem>>, vector<864x32xbf16>
    %cst = arith.constant dense<0.000000e+00> : vector<128x32xf32>
    %2 = tpu.matmul %0, %1, %cst {dimension_numbers = #tpu.dot_dimension_numbers<[1], [0], [0], [1], [0, 0, 1, 1], [], []>} : vector<128x864xbf16>, vector<864x32xbf16>, vector<128x32xf32> -> vector<128x32xf32>
    %cst_3 = arith.constant dense<0.000000e+00> : vector<32xf32>
    %3 = vector.multi_reduction <add>, %2, %cst_3 [0] : vector<128x32xf32> to vector<32xf32>
    %4 = vector.shape_cast %3 : vector<32xf32> to vector<1x1x32xf32>
    %c0_4 = arith.constant 0 : index
    %c0_5 = arith.constant 0 : index
    %c0_6 = arith.constant 0 : index
    %5 = vector.load %arg4[%c0_4, %c0_5, %c0_6] : memref<1x2x32xf32, #tpu.memory_space<vmem>>, vector<1x1x32xf32>
    tpu.vector_store %arg4[%c0_4, %c0_5, %c0_6], %4 {strides = array<i32>} : memref<1x2x32xf32, #tpu.memory_space<vmem>>, vector<1x1x32xf32>,
    %6 = arith.mulf %2, %2 : vector<128x32xf32>
    %cst_7 = arith.constant dense<0.000000e+00> : vector<32xf32>
    %7 = vector.multi_reduction <add>, %6, %cst_7 [0] : vector<128x32xf32> to vector<32xf32>
    %8 = vector.shape_cast %7 : vector<32xf32> to vector<1x1x32xf32>
    %c0_8 = arith.constant 0 : index
    %c1 = arith.constant 1 : index
    %c0_9 = arith.constant 0 : index
    %9 = vector.load %arg4[%c0_8, %c1, %c0_9] : memref<1x2x32xf32, #tpu.memory_space<vmem>>, vector<1x1x32xf32>
    tpu.vector_store %arg4[%c0_8, %c1, %c0_9], %8 {strides = array<i32>} : memref<1x2x32xf32, #tpu.memory_space<vmem>>, vector<1x1x32xf32>,
    %10 = arith.truncf %2 : vector<128x32xf32> to vector<128x32xbf16>
    %c0_10 = arith.constant 0 : index
    %c0_11 = arith.constant 0 : index
    %11 = vector.load %arg3[%c0_10, %c0_11] : memref<128x32xbf16, #tpu.memory_space<vmem>>, vector<128x32xbf16>
    tpu.vector_store %arg3[%c0_10, %c0_11], %10 {strides = array<i32>} : memref<128x32xbf16, #tpu.memory_space<vmem>>, vector<128x32xbf16>,
    return
  }
  func.func @transform_0(%arg0: i32) -> (i32, i32) {
    %c0_i32 = arith.constant 0 : i32
    %c0_i32_0 = arith.constant 0 : i32
    return %arg0, %c0_i32 : i32, i32
  }
  func.func @transform_1(%arg0: i32) -> (i32, i32) {
    %c0_i32 = arith.constant 0 : i32
    %c0_i32_0 = arith.constant 0 : i32
    %c0_i32_1 = arith.constant 0 : i32
    return %c0_i32, %c0_i32_0 : i32, i32
  }
  func.func @transform_2(%arg0: i32) -> (i32, i32) {
    %c0_i32 = arith.constant 0 : i32
    %c0_i32_0 = arith.constant 0 : i32
    return %arg0, %c0_i32 : i32, i32
  }
  func.func @transform_3(%arg0: i32) -> (i32, i32, i32) {
    %c0_i32 = arith.constant 0 : i32
    %c0_i32_0 = arith.constant 0 : i32
    %c0_i32_1 = arith.constant 0 : i32
    return %arg0, %c0_i32, %c0_i32_0 : i32, i32, i32
  }
}

</mosaic_0001>

<bundles_post_ra>
// kernel: tpu_custom_call.1
= control target key start
LH: loop header
LB: loop body
LE: loop exit
PB: predicated region body
PF: predicated region fallthrough
CT: control target
= control target key end

     0   :  { %9 = vsyncpa [#allocation3], 0  ;;  %s2791_s0 = inlined_call_operand.vmem [shape: bf16[256,864], index: 0, kind: input, shape index: {}]   ;;  %s2792_s1 = inlined_call_operand.vmem [shape: bf16[864,32], index: 1, kind: input, shape index: {}]   ;;  %s2793_s2 = inlined_call_operand.vmem [shape: bf16[256,32], index: 2, kind: output, shape index: {0}]   ;;  %s2794_s3 = inlined_call_operand.hbm [shape: f32[2,2,32], index: 3, kind: output, shape index: {1}]  }
   0x1   :  { %11 = vsyncpa [#allocation3 + $0x1], 0  ;;  %s2316_s12 = smov 0   ;;  %s2318_s13 = smov 0  }
   0x2   :  { %s2320_s14 = smov 0   ;;  %s2322_s15 = smov 0  }
   0x3 LB: > { %s2337_s16 = sadd.s32 4294967295, %s2293_s15   ;;  %s1660_s17 = sadd.s32 4294967294, %s2293_s15   ;;  %s2293_s15 = sphi %s2322_s15, %s2800_s15   ;;  %s2289_s14 = sphi %s2320_s14, %s2799_s14   ;;  %s2285_s13 = sphi %s2318_s13, %s2798_s13   ;;  %s2281_s12 = sphi %s2316_s12, %s2797_s12  }
   0x4   : > { %s2341_s18 = sadd.s32 1, %s2293_s15   ;;  %s97_s19 = sadd.s32 1, %s2289_s14 }
   0x5   : > { %s94_s20 = ssub.s32 %s2293_s15, %s2341_s18  ;;  %p107_p0 = scmp.ne.s32.totalorder %s2289_s14, %s2285_s13 }
   0x6   : > { %p95_p1 = scmp.eq.s32.totalorder %s94_s20, 0  ;;  %p108_p2 = scmp.eq.s32.totalorder %s2337_s16, 1 }
   0x7   : > { %p113_p3 = scmp.ne.s32.totalorder %s2285_s13, %s2281_s12  ;;  %p114_p4 = scmp.eq.s32.totalorder %s1660_s17, 1 }
   0x8   : > { %s2352_s21 = scalar_select %p95_p1, %s2289_s14, %s97_s19  }
   0x9   : > { %p2354_p5 = por %p108_p2, %p107_p0  ;;  %p2358_p6 = por %p114_p4, %p113_p3 }
   0xa   : > { %p1663_p7 = scmp.ge.s32.totalorder %s2293_s15, 1  ;;  %p145_p8 = scmp.lt.s32.totalorder %s2293_s15, 3 }
   0xc   : > { %p146_p9 = pnand %p1663_p7, %p145_p8 }
   0xd   : > { %v2097_v0 = vld [vmem:[%s2792_s1 + $0x40] sm:$0xff] (!%p146_p9)   ;;  %v2101_v4 = vld [vmem:[%s2792_s1 + $0x48] sm:$0xff] (!%p146_p9)   ;;  %v2105_v8 = vld [vmem:[%s2792_s1 + $0x50] sm:$0xff] (!%p146_p9)   ;;  %s1665_s9 = sshll.u32 (!%p146_p9), %s2337_s16, 4  ;;  %vm965_vm0 = vcmask (!%p146_p9), 785408   ;;  %vm1378_vm1 = vcmask (!%p146_p9), 261120  }
   0xe   : > { %149 = sbr.rel (%p146_p9) target bundleno = 420 (0x1a4), region = 28  ;;  %v2098_v1 = vld [vmem:[%s2792_s1 + $0xc0] sm:$0xff] (!%p146_p9)   ;;  %1823 = vmatprep.subr.bf16.mxu0 (!%p146_p9), %v2097_v0  ;;  %v2102_v5 = vld [vmem:[%s2792_s1 + $0xc8] sm:$0xff] (!%p146_p9)   ;;  %v2106_v9 = vld [vmem:[%s2792_s1 + $0xd0] sm:$0xff] (!%p146_p9)   ;;  %p176_p10 = scmp.lt.s32.totalorder (!%p146_p9), %s1665_s9, 31  ;;  %vm1536_vm2 = vcmask (!%p146_p9), 257024  }
   0xf   : > { %v2099_v2 = vld [vmem:[%s2792_s1] sm:$0xff] (!%p146_p9)   ;;  %1887 = vmatprep.subr.bf16.mxu1 (!%p146_p9), %v2098_v1  ;;  %v2103_v6 = vld [vmem:[%s2792_s1 + $0x8] sm:$0xff] (!%p146_p9)   ;;  %v2107_v10 = vld [vmem:[%s2792_s1 + $0x10] sm:$0xff] (!%p146_p9)   ;;  %vm1416_vm3 = vcmask (!%p146_p9), 253952   ;;  %s1804_s20 = sshll.u32 (!%p146_p9), %s2337_s16, 5  ;;  %s2295_s16 = smov (!%p146_p9), [#allocation2]  }
  0x10   : > { %v2100_v3 = vld [vmem:[%s2792_s1 + $0x80] sm:$0xff] (!%p146_p9)   ;;  %1824 = vmatpush3.bf16.msra.mxu0 (!%p146_p9), %v2099_v2  ;;  %v2104_v7 = vld [vmem:[%s2792_s1 + $0x88] sm:$0xff] (!%p146_p9)   ;;  %v2108_v11 = vld [vmem:[%s2792_s1 + $0x90] sm:$0xff] (!%p146_p9)   ;;  %s2749_s28 = scalar_lea.hbm (!%p146_p9), %s2794_s3, %s1804_s20  ;;  %s2235_s4 = sshll.u32 (!%p146_p9), %s2295_s16, 4  ;;  %s2236_s4 = int_to_ptr.vmem [resolvable:$false] %s2235_s4 }
  0x11   : > { %1888 = vmatpush3.bf16.msra.mxu1 (!%p146_p9), %v2100_v3  ;;  %1825 = vmatprep.subr.bf16.mxu0 (!%p146_p9), %v2101_v4  ;;  %v2109_v12 = vld [vmem:[%s2792_s1 + $0x58] sm:$0xff] (!%p146_p9)   ;;  %v2113_v16 = vld [vmem:[%s2792_s1 + $0x60] sm:$0xff] (!%p146_p9)   ;;  %v2117_v20 = vld [vmem:[%s2792_s1 + $0x68] sm:$0xff] (!%p146_p9)   ;;  %s2237_s5 = scalar_lea.vmem (!%p146_p9), %s2236_s4, 64 }
  0x12   : > { %1889 = vmatprep.subr.bf16.mxu1 (!%p146_p9), %v2102_v5  ;;  %v2110_v13 = vld [vmem:[%s2792_s1 + $0xd8] sm:$0xff] (!%p146_p9)   ;;  %v2114_v17 = vld [vmem:[%s2792_s1 + $0xe0] sm:$0xff] (!%p146_p9)   ;;  %v2118_v21 = vld [vmem:[%s2792_s1 + $0xe8] sm:$0xff] (!%p146_p9)  }
  0x13   : > { %v2111_v14 = vld [vmem:[%s2792_s1 + $0x18] sm:$0xff] (!%p146_p9)   ;;  %v2115_v18 = vld [vmem:[%s2792_s1 + $0x20] sm:$0xff] (!%p146_p9)   ;;  %v2119_v22 = vld [vmem:[%s2792_s1 + $0x28] sm:$0xff] (!%p146_p9)  }
  0x14   : > { %1826 = vmatpush3.bf16.msra.mxu0 (!%p146_p9), %v2103_v6  ;;  %v2112_v15 = vld [vmem:[%s2792_s1 + $0x98] sm:$0xff] (!%p146_p9)   ;;  %v2116_v19 = vld [vmem:[%s2792_s1 + $0xa0] sm:$0xff] (!%p146_p9)   ;;  %v2120_v23 = vld [vmem:[%s2792_s1 + $0xa8] sm:$0xff] (!%p146_p9)  }
  0x15   : > { %1890 = vmatpush3.bf16.msra.mxu1 %v2104_v7  ;;  %1827 = vmatprep.subr.bf16.mxu0 %v2105_v8  ;;  %s2802_s9 = smov (!%p176_p10, %s1665_s9), 31  ;;  %v2121_v24 = vld [vmem:[%s2792_s1 + $0x70] sm:$0xff]   ;;  %v2125_v28 = vld [vmem:[%s2792_s1 + $0x78] sm:$0xff]   ;;  %v2135_v36 = vld [vmem:[%s2792_s1 + $0x140] sm:$0xff]  }
  0x16   : > { %1891 = vmatprep.subr.bf16.mxu1 %v2106_v9  ;;  %v2122_v25 = vld [vmem:[%s2792_s1 + $0xf0] sm:$0xff]   ;;  %s2057_s24 = smul.u32 28, %s2802_s9  ;;  %v2126_v29 = vld [vmem:[%s2792_s1 + $0xf8] sm:$0xff]   ;;  %v2136_v37 = vld [vmem:[%s2792_s1 + $0x100] sm:$0xff]  }
  0x17   : > { %v2123_v26 = vld [vmem:[%s2792_s1 + $0x30] sm:$0xff]   ;;  %v2127_v30 = vld [vmem:[%s2792_s1 + $0x38] sm:$0xff]   ;;  %v2143_v42 = vld [vmem:[%s2792_s1 + $0x148] sm:$0xff]  }
  0x18   : > { %1828 = vmatpush3.bf16.msra.mxu0 %v2107_v10  ;;  %v2124_v27 = vld [vmem:[%s2792_s1 + $0xb0] sm:$0xff]   ;;  %s2461_s8 = scalar_lea.vmem %s2791_s0, %s2057_s24  ;;  %v2128_v31 = vld [vmem:[%s2792_s1 + $0xb8] sm:$0xff]   ;;  %v2144_v43 = vld [vmem:[%s2792_s1 + $0x108] sm:$0xff]  }
  0x19   : > { %1892 = vmatpush3.bf16.msra.mxu1 %v2108_v11  ;;  %1829 = vmatprep.subr.bf16.mxu0 %v2109_v12  ;;  %v2129_v32 = vld [vmem:[%s2461_s8] ss:$28 sps:$4 sm:$0xff]   ;;  %v2132_v34 = vld [vmem:[%s2461_s8 + $0x8] ss:$28 sps:$4 sm:$0xff]   ;;  %v2141_v40 = vld [vmem:[%s2461_s8 + $0x38] ss:$28 sps:$4 sm:$0xff]  }
  0x1a   : > { %1893 = vmatprep.subr.bf16.mxu1 %v2110_v13  ;;  %v2131_v33 = vld [vmem:[%s2461_s8 + $0x4] ss:$28 sps:$4 sm:$0xff]   ;;  %v2134_v35 = vld [vmem:[%s2461_s8 + $0xc] ss:$28 sps:$4 sm:$0xff]   ;;  %v2137_v38 = vld [vmem:[%s2461_s8 + $0x3c] ss:$28 sps:$4 sm:$0xff]  }
  0x1b   : > { %1022 = vmatprep.mubr.bf16.mxu0 %v2131_v33  ;;  %1119 = vmatprep.mubr.bf16.mxu1 %v2134_v35  ;;  %v2139_v39 = vld [vmem:[%s2461_s8 + $0x44] ss:$28 sps:$4 sm:$0xff]   ;;  %v2145_v44 = vld [vmem:[%s2461_s8 + $0x74] ss:$28 sps:$4 sm:$0xff]   ;;  %v2147_v45 = vld [vmem:[%s2461_s8 + $0x7c] ss:$28 sps:$4 sm:$0xff]  }
  0x1c   : > { %1830 = vmatpush3.bf16.msra.mxu0 %v2111_v14  ;;  %v2142_v41 = vld [vmem:[%s2461_s8 + $0x40] ss:$28 sps:$4 sm:$0xff]   ;;  %v2151_v46 = vld [vmem:[%s2792_s1 + $0x150] sm:$0xff]   ;;  %v2153_v50 = vld [vmem:[%s2461_s8 + $0xac] ss:$28 sps:$4 sm:$0xff]  }
  0x1d   : > { %1894 = vmatpush3.bf16.msra.mxu1 %v2112_v15  ;;  %1831 = vmatprep.subr.bf16.mxu0 %v2113_v16  ;;  %v2152_v47 = vld [vmem:[%s2792_s1 + $0x110] sm:$0xff]   ;;  %v2159_v52 = vld [vmem:[%s2792_s1 + $0x158] sm:$0xff]   ;;  %v2157_v54 = vld [vmem:[%s2461_s8 + $0xa8] ss:$28 sps:$4 sm:$0xff]  }
  0x1e   : > { %1895 = vmatprep.subr.bf16.mxu1 %v2114_v17  ;;  %v2149_v48 = vld [vmem:[%s2461_s8 + $0x70] ss:$28 sps:$4 sm:$0xff]   ;;  %v2150_v49 = vld [vmem:[%s2461_s8 + $0x78] ss:$28 sps:$4 sm:$0xff]   ;;  %v2167_v55 = vld [vmem:[%s2792_s1 + $0x160] sm:$0xff]  }
  0x1f   : > { %v2155_v51 = vld [vmem:[%s2461_s8 + $0xb4] ss:$28 sps:$4 sm:$0xff]   ;;  %v2160_v53 = vld [vmem:[%s2792_s1 + $0x118] sm:$0xff]   ;;  %v2168_v57 = vld [vmem:[%s2792_s1 + $0x180] sm:$0xff]  }
  0x20   : > { %1832 = vmatpush3.bf16.msra.mxu0 %v2115_v18  ;;  %v2158_v56 = vld [vmem:[%s2461_s8 + $0xb0] ss:$28 sps:$4 sm:$0xff]   ;;  %v2169_v58 = vld [vmem:[%s2792_s1 + $0x120] sm:$0xff]   ;;  %v2170_v2 = vld [vmem:[%s2461_s8 + $0x11c] ss:$28 sps:$4 sm:$0xff]  }
  0x21   : > { %1896 = vmatpush3.bf16.msra.mxu1 %v2116_v19  ;;  %1833 = vmatprep.subr.bf16.mxu0 %v2117_v20  ;;  %v2161_v59 = vld [vmem:[%s2461_s8 + $0xe4] ss:$28 sps:$4 sm:$0xff]   ;;  %v2163_v60 = vld [vmem:[%s2461_s8 + $0xec] ss:$28 sps:$4 sm:$0xff]   ;;  %v2185_v4 = vld [vmem:[%s2792_s1 + $0x170] sm:$0xff]  }
  0x22   : > { %1897 = vmatprep.subr.bf16.mxu1 %v2118_v21  ;;  %v2176_v61 = vld [vmem:[%s2792_s1 + $0x168] sm:$0xff]   ;;  %v2165_v0 = vld [vmem:[%s2461_s8 + $0xe0] ss:$28 sps:$4 sm:$0xff]   ;;  %v2186_v5 = vld [vmem:[%s2792_s1 + $0x130] sm:$0xff]  }
  0x23   : > { %v2177_v62 = vld [vmem:[%s2792_s1 + $0x128] sm:$0xff]   ;;  %v2172_v3 = vld [vmem:[%s2461_s8 + $0x124] ss:$28 sps:$4 sm:$0xff]   ;;  %v2187_v6 = vld [vmem:[%s2792_s1 + $0x190] sm:$0xff]  }
  0x24   : > { %1834 = vmatpush3.bf16.msra.mxu0 %v2119_v22  ;;  %v2178_v63 = vld [vmem:[%s2792_s1 + $0x188] sm:$0xff]   ;;  %v2174_v7 = vld [vmem:[%s2461_s8 + $0x118] ss:$28 sps:$4 sm:$0xff]   ;;  %v2175_v8 = vld [vmem:[%s2461_s8 + $0x120] ss:$28 sps:$4 sm:$0xff]  }
  0x25   : > { %1898 = vmatpush3.bf16.msra.mxu1 %v2120_v23  ;;  %1835 = vmatprep.subr.bf16.mxu0 %v2121_v24  ;;  %v2166_v1 = vld [vmem:[%s2461_s8 + $0xe8] ss:$28 sps:$4 sm:$0xff]   ;;  %v2179_v9 = vld [vmem:[%s2461_s8 + $0x154] ss:$28 sps:$4 sm:$0xff]   ;;  %v2194_v10 = vld [vmem:[%s2792_s1 + $0x178] sm:$0xff]  }
  0x26   : > { %1899 = vmatprep.subr.bf16.mxu1 %v2122_v25  ;;  %v2181_v11 = vld [vmem:[%s2461_s8 + $0x15c] ss:$28 sps:$4 sm:$0xff]   ;;  %v2197_v14 = vld [vmem:[%s2792_s1 + $0x1a0] sm:$0xff]   ;;  %v2201_v15 = vld [vmem:[%s2792_s1 + $0x1a8] sm:$0xff]  }
  0x27   : > { %v2195_v12 = vld [vmem:[%s2792_s1 + $0x198] sm:$0xff]   ;;  %v2183_v16 = vld [vmem:[%s2461_s8 + $0x150] ss:$28 sps:$4 sm:$0xff]   ;;  %v2192_v20 = vld [vmem:[%s2461_s8 + $0x188] ss:$28 sps:$4 sm:$0xff]  }
  0x28   : > { %1836 = vmatpush3.bf16.msra.mxu0 %v2123_v26  ;;  %v2196_v13 = vld [vmem:[%s2792_s1 + $0x138] sm:$0xff]   ;;  %v2188_v18 = vld [vmem:[%s2461_s8 + $0x18c] ss:$28 sps:$4 sm:$0xff]   ;;  %v2190_v19 = vld [vmem:[%s2461_s8 + $0x194] ss:$28 sps:$4 sm:$0xff]  }
  0x29   : > { %1900 = vmatpush3.bf16.msra.mxu1 %v2124_v27  ;;  %1837 = vmatprep.subr.bf16.mxu0 %v2125_v28  ;;  %v2184_v17 = vld [vmem:[%s2461_s8 + $0x158] ss:$28 sps:$4 sm:$0xff]   ;;  %v2193_v21 = vld [vmem:[%s2461_s8 + $0x190] ss:$28 sps:$4 sm:$0xff]   ;;  %v2210_v27 = vld [vmem:[%s2461_s8 + $0x88] ss:$28 sps:$4 sm:$0xff]  }
  0x2a   : > { %1901 = vmatprep.subr.bf16.mxu1 %v2126_v29  ;;  %v2200_v22 = vld [vmem:[%s2461_s8 + $0x14] ss:$28 sps:$4 sm:$0xff]   ;;  %v2204_v26 = vld [vmem:[%s2461_s8 + $0x4c] ss:$28 sps:$4 sm:$0xff]   ;;  %v2207_v29 = vld [vmem:[%s2461_s8 + $0x84] ss:$28 sps:$4 sm:$0xff]  }
  0x2b   : > { %v2202_v23 = vld [vmem:[%s2461_s8 + $0x18] ss:$28 sps:$4 sm:$0xff]   ;;  %v2198_v24 = vld [vmem:[%s2461_s8 + $0x10] ss:$28 sps:$4 sm:$0xff]   ;;  %v2206_v28 = vld [vmem:[%s2461_s8 + $0x48] ss:$28 sps:$4 sm:$0xff]  }
  0x2c   : > { %1838 = vmatpush3.bf16.msra.mxu0 %v2127_v30  ;;  %v2203_v25 = vld [vmem:[%s2461_s8 + $0x50] ss:$28 sps:$4 sm:$0xff]   ;;  %v2211_v30 = vld [vmem:[%s2461_s8 + $0xc0] ss:$28 sps:$4 sm:$0xff]   ;;  %v2226_v35 = vld [vmem:[%s2461_s8 + $0x168] ss:$28 sps:$4 sm:$0xff]  }
  0x2d   : > { %1902 = vmatpush3.bf16.msra.mxu1 %v2128_v31  ;;  %1951 = vmatprep.subr.bf16.mxu0 %v2135_v36  ;;  %v2218_v31 = vld [vmem:[%s2461_s8 + $0xf8] ss:$28 sps:$4 sm:$0xff]  }
  0x2e   : > { %2029 = vmatprep.subr.bf16.mxu1 %v2168_v57  ;;  %v2212_v33 = vld [vmem:[%s2461_s8 + $0xbc] ss:$28 sps:$4 sm:$0xff]  }
  0x2f   : > { %1023 = vmatmul.mubr.bf16.vlgmr.msra.gmra.mrb[0].mxu0 %v2129_v32  ;;  %v2209_v32 = vld [vmem:[%s2461_s8 + $0x80] ss:$28 sps:$4 sm:$0xff]   ;;  %v2214_v36 = vld [vmem:[%s2461_s8 + $0xb8] ss:$28 sps:$4 sm:$0xff]  }
  0x30   : > { %1120 = vmatmul.mubr.bf16.vlgmr.msra.gmra.mrb[0].mxu1 %v2132_v34  ;;  %1952 = vmatpush3.bf16.msra.mxu0 %v2136_v37  ;;  %v2219_v34 = vld [vmem:[%s2461_s8 + $0x130] ss:$28 sps:$4 sm:$0xff]  }
  0x31   : > { %1030 = vmatprep.mubr.bf16.mxu0 %v2137_v38  ;;  %1127 = vmatprep.mubr.bf16.mxu1 %v2139_v39  ;;  %v2215_v37 = vld [vmem:[%s2461_s8 + $0xf4] ss:$28 sps:$4 sm:$0xff]   ;;  %v2227_v38 = vld [vmem:[%s2461_s8 + $0x1a0] ss:$28 sps:$4 sm:$0xff]  }
  0x32   : > { %1953 = vmatprep.subr.bf16.mxu0 %v2143_v42  ;;  %2030 = vmatpush3.bf16.msra.mxu1 %v2168_v57  ;;  %v2217_v39 = vld [vmem:[%s2461_s8 + $0xf0] ss:$28 sps:$4 sm:$0xff]   ;;  %v2223_v42 = vld [vmem:[%s2461_s8 + $0x164] ss:$28 sps:$4 sm:$0xff]  }
  0x33   : > { %2031 = vmatprep.subr.bf16.mxu1 %v2178_v63 }
  0x34   : > { %1954 = vmatpush3.bf16.msra.mxu0 %v2144_v43  ;;  %v2225_v43 = vld [vmem:[%s2461_s8 + $0x160] ss:$28 sps:$4 sm:$0xff]  }
  0x35   : > { %1955 = vmatprep.subr.bf16.mxu0 %v2151_v46 }
  0x36   : > { %2032 = vmatpush3.bf16.msra.mxu1 %v2178_v63 }
  0x37   : > { %1031 = vmatmul.mubr.bf16.gmra.mrb[4].mxu0 %v2141_v40  ;;  %2033 = vmatprep.subr.bf16.mxu1 %v2187_v6  ;;  %v2220_v40 = vld [vmem:[%s2461_s8 + $0x12c] ss:$28 sps:$4 sm:$0xff]  }
  0x38   : > { %1128 = vmatmul.mubr.bf16.gmra.mrb[4].mxu1 %v2142_v41  ;;  %1038 = vmatprep.mubr.bf16.mxu0 %v2145_v44  ;;  %v2222_v41 = vld [vmem:[%s2461_s8 + $0x128] ss:$28 sps:$4 sm:$0xff]   ;;  %v2228_v44 = vld [vmem:[%s2461_s8 + $0x19c] ss:$28 sps:$4 sm:$0xff]  }
  0x39   : > { %1135 = vmatprep.mubr.bf16.mxu1 %v2147_v45  ;;  %1956 = vmatpush3.bf16.msra.mxu0 %v2152_v47  ;;  %v2230_v45 = vld [vmem:[%s2461_s8 + $0x198] ss:$28 sps:$4 sm:$0xff]   ;;  %s1668_s8 = sshll.u32 %s2802_s9, 2  ;;  %s172_s9 = sand.u32 1, %s2285_s13  }
  0x3a   : > { %1957 = vmatprep.subr.bf16.mxu0 %v2159_v52  ;;  %2034 = vmatpush3.bf16.msra.mxu1 %v2187_v6  ;;  %s2637_s17 = scalar_lea.vmem %s2793_s2, %s1668_s8  ;;  %s1664_s19 = sshll.u32 %s172_s9, 1 }
  0x3b   : > { %2035 = vmatprep.subr.bf16.mxu1 %v2195_v12  ;;  %s174_s24 = scalar_lea.vmem [#allocation2], %s1664_s19  ;;  %s1559_s29 = scalar_lea.sflag [#allocation3], %s172_s9 }
  0x3c   : > { %s1576_s25 = sshll.u32 %s174_s24, 4  ;;  %s2751_s25 = int_to_ptr.vmem [resolvable:$true] %s1576_s25 }
  0x3d   : > { %1958 = vmatpush3.bf16.msra.mxu0 %v2160_v53  ;;  %s2231_s30 = scalar_lea.vmem %s2751_s25, 32  ;;  %p2238_p0 = scmp.lt.s32.totalorder %s2751_s25, %s2236_s4 }
  0x3e   : > { %1959 = vmatprep.subr.bf16.mxu0 %v2167_v55  ;;  %2036 = vmatpush3.bf16.msra.mxu1 %v2195_v12  ;;  %p2232_p11 = scmp.ne.s32.totalorder %s2751_s25, %s2231_s30  ;;  %p2239_p1 = scmp.lt.s32.totalorder %s2237_s5, %s2231_s30 }
  0x3f   : > { %1039 = vmatmul.mubr.bf16.gmra.mrb[8].mxu0 %v2149_v48  ;;  %2037 = vmatprep.subr.bf16.mxu1 %v2197_v14 }
  0x40   : > { %1136 = vmatmul.mubr.bf16.gmra.mrb[8].mxu1 %v2150_v49  ;;  %1046 = vmatprep.mubr.bf16.mxu0 %v2153_v50  ;;  %p2233_p12 = pnand %p2232_p11, %p2354_p5  ;;  %p2240_p2 = por %p2239_p1, %p2238_p0 }
  0x41   : > { %1143 = vmatprep.mubr.bf16.mxu1 %v2155_v51  ;;  %1960 = vmatpush3.bf16.msra.mxu0 %v2169_v58 }
  0x42   : > { %1961 = vmatprep.subr.bf16.mxu0 %v2176_v61  ;;  %2038 = vmatpush3.bf16.msra.mxu1 %v2197_v14  ;;  %p2234_p13 = pneg %p2233_p12 }
  0x43   : > { %2039 = vmatprep.subr.bf16.mxu1 %v2201_v15 }
  0x44   : > { %p2241_p3 = pnand %p2240_p2, %p2234_p13 }
  0x45   : > { %1962 = vmatpush3.bf16.msra.mxu0 %v2177_v62 }
  0x46   : > { %1963 = vmatprep.subr.bf16.mxu0 %v2185_v4  ;;  %2040 = vmatpush3.bf16.msra.mxu1 %v2201_v15 }
  0x47   : > { %1047 = vmatmul.mubr.bf16.gmra.mrb[12].mxu0 %v2157_v54 }
  0x48   : > { %1144 = vmatmul.mubr.bf16.gmra.mrb[12].mxu1 %v2158_v56  ;;  %1054 = vmatprep.mubr.bf16.mxu0 %v2161_v59 }
  0x49   : > { %1151 = vmatprep.mubr.bf16.mxu1 %v2163_v60  ;;  %1964 = vmatpush3.bf16.msra.mxu0 %v2186_v5 }
  0x4a   : > { %1965 = vmatprep.subr.bf16.mxu0 %v2194_v10 }
  0x4d   : > { %1966 = vmatpush3.bf16.msra.mxu0 %v2196_v13 }
  0x4f   : > { %1055 = vmatmul.mubr.bf16.gmra.mrb[16].mxu0 %v2165_v0 }
  0x50   : > { %1152 = vmatmul.mubr.bf16.gmra.mrb[16].mxu1 %v2166_v1  ;;  %1062 = vmatprep.mubr.bf16.mxu0 %v2170_v2 }
  0x51   : > { %1159 = vmatprep.mubr.bf16.mxu1 %v2172_v3 }
  0x57   : > { %1063 = vmatmul.mubr.bf16.gmra.mrb[20].mxu0 %v2174_v7 }
  0x58   : > { %1160 = vmatmul.mubr.bf16.gmra.mrb[20].mxu1 %v2175_v8  ;;  %1070 = vmatprep.mubr.bf16.mxu0 %v2179_v9 }
  0x59   : > { %1167 = vmatprep.mubr.bf16.mxu1 %v2181_v11 }
  0x5f   : > { %1071 = vmatmul.mubr.bf16.gmra.mrb[24].mxu0 %v2183_v16 }
  0x60   : > { %1168 = vmatmul.mubr.bf16.gmra.mrb[24].mxu1 %v2184_v17  ;;  %1078 = vmatprep.mubr.bf16.mxu0 %v2188_v18 }
  0x61   : > { %1175 = vmatprep.mubr.bf16.mxu1 %v2190_v19 }
  0x67   : > { %1079 = vmatmul.mubr.bf16.gmra.mrb[28].mxu0 %v2192_v20 }
  0x68   : > { %1176 = vmatmul.mubr.bf16.gmra.mrb[28].mxu1 %v2193_v21  ;;  %1216 = vmatprep.mubr.bf16.mxu0 %v2200_v22 }
  0x69   : > { %2041 = vmatprep.mubr.msk.bf16.mxu1 %vm965_vm0, %v2202_v23 }
  0x6f   : > { %1217 = vmatmul.mubr.bf16.vlgmr.msra.gmra.mrb[32].mxu0 %v2198_v24 }
  0x70   : > { %2042 = vmatmul.mubr.msk.bf16.vlgmr.msra.gmra.mrb[32].mxu1 %vm965_vm0, %v2203_v25  ;;  %1224 = vmatprep.mubr.bf16.mxu0 %v2204_v26 }
  0x71   : > { %2045 = vmatprep.mubr.msk.bf16.mxu1 %vm965_vm0, %v2210_v27 }
  0x77   : > { %1225 = vmatmul.mubr.bf16.gmra.mrb[36].mxu0 %v2206_v28 }
  0x78   : > { %1232 = vmatprep.mubr.bf16.mxu0 %v2207_v29  ;;  %2046 = vmatmul.mubr.msk.bf16.gmra.mrb[36].mxu1 %vm965_vm0, %v2211_v30 }
  0x79   : > { %2049 = vmatprep.mubr.msk.bf16.mxu1 %vm965_vm0, %v2218_v31 }
  0x7f   : > { %1233 = vmatmul.mubr.bf16.gmra.mrb[40].mxu0 %v2209_v32 }
  0x80   : > { %1240 = vmatprep.mubr.bf16.mxu0 %v2212_v33  ;;  %2050 = vmatmul.mubr.msk.bf16.gmra.mrb[40].mxu1 %vm965_vm0, %v2219_v34 }
  0x81   : > { %2053 = vmatprep.mubr.msk.bf16.mxu1 %vm965_vm0, %v2226_v35 }
  0x87   : > { %1241 = vmatmul.mubr.bf16.gmra.mrb[44].mxu0 %v2214_v36 }
  0x88   : > { %1248 = vmatprep.mubr.bf16.mxu0 %v2215_v37  ;;  %2054 = vmatmul.mubr.msk.bf16.gmra.mrb[44].mxu1 %vm965_vm0, %v2227_v38 }
  0x8f   : > { %1249 = vmatmul.mubr.bf16.gmra.mrb[48].mxu0 %v2217_v39 }
  0x90   : > { %1256 = vmatprep.mubr.bf16.mxu0 %v2220_v40 }
  0x97   : > { %1257 = vmatmul.mubr.bf16.gmra.mrb[52].mxu0 %v2222_v41 }
  0x98   : > { %1264 = vmatprep.mubr.bf16.mxu0 %v2223_v42 }
  0x9f   : > { %1265 = vmatmul.mubr.bf16.gmra.mrb[56].mxu0 %v2225_v43 }
  0xa0   : > { %1272 = vmatprep.mubr.bf16.mxu0 %v2228_v44 }
  0xa7   : > { %1273 = vmatmul.mubr.bf16.gmra.mrb[60].mxu0 %v2230_v45 }
 0x102   : > { %v1839_v46 = vpop.f32.mrb[0].mxu0 }
 0x103   : > { %v1903_v47 = vpop.f32.mrb[0].mxu1  ;;  %v1840_v48 = vpop.f32.mrb[1].mxu0 }
 0x104   : > { %v1841_v49 = vadd.f32 %v1840_v48, %v1839_v46  ;;  %v1904_v50 = vpop.f32.mrb[1].mxu1  ;;  %v1842_v51 = vpop.f32.mrb[2].mxu0 }
 0x105   : > { %v1905_v52 = vadd.f32 %v1904_v50, %v1903_v47  ;;  %v1906_v53 = vpop.f32.mrb[2].mxu1  ;;  %v1843_v54 = vpop.f32.mrb[3].mxu0 }
 0x106   : > { %v1844_v55 = vadd.f32 %v1843_v54, %v1842_v51  ;;  %v1907_v56 = vpop.f32.mrb[3].mxu1 }
 0x107   : > { %v2599_v57 = vadd.f32 %v1905_v52, %v1841_v49  ;;  %v1908_v58 = vadd.f32 %v1907_v56, %v1906_v53 }
 0x109   : > { %v2601_v59 = vadd.f32 %v1908_v58, %v1844_v55 }
 0x10a   : > { %v1845_v60 = vpop.f32.mrb[4].mxu0 }
 0x10b   : > { %v1909_v61 = vpop.f32.mrb[4].mxu1  ;;  %v1846_v62 = vpop.f32.mrb[5].mxu0 }
 0x10c   : > { %v1847_v63 = vadd.f32 %v1846_v62, %v1845_v60  ;;  %v1910_v0 = vpop.f32.mrb[5].mxu1  ;;  %v1848_v1 = vpop.f32.mrb[6].mxu0 }
 0x10d   : > { %v1911_v2 = vadd.f32 %v1910_v0, %v1909_v61  ;;  %v1912_v3 = vpop.f32.mrb[6].mxu1  ;;  %v1849_v4 = vpop.f32.mrb[7].mxu0 }
 0x10e   : > { %v1850_v5 = vadd.f32 %v1849_v4, %v1848_v1  ;;  %v1913_v6 = vpop.f32.mrb[7].mxu1 }
 0x10f   : > { %v2603_v7 = vadd.f32 %v1911_v2, %v1847_v63  ;;  %v1914_v8 = vadd.f32 %v1913_v6, %v1912_v3 }
 0x111   : > { %v2605_v9 = vadd.f32 %v1914_v8, %v1850_v5 }
 0x112   : > { %v1851_v10 = vpop.f32.mrb[8].mxu0 }
 0x113   : > { %v1915_v11 = vpop.f32.mrb[8].mxu1  ;;  %v1852_v12 = vpop.f32.mrb[9].mxu0 }
 0x114   : > { %v1853_v13 = vadd.f32 %v1852_v12, %v1851_v10  ;;  %v1916_v14 = vpop.f32.mrb[9].mxu1  ;;  %v1854_v15 = vpop.f32.mrb[10].mxu0 }
 0x115   : > { %v1917_v16 = vadd.f32 %v1916_v14, %v1915_v11  ;;  %v1918_v17 = vpop.f32.mrb[10].mxu1  ;;  %v1855_v18 = vpop.f32.mrb[11].mxu0 }
 0x116   : > { %v1856_v19 = vadd.f32 %v1855_v18, %v1854_v15  ;;  %v1919_v20 = vpop.f32.mrb[11].mxu1 }
 0x117   : > { %v2607_v21 = vadd.f32 %v1917_v16, %v1853_v13  ;;  %v1920_v22 = vadd.f32 %v1919_v20, %v1918_v17 }
 0x119   : > { %v2609_v23 = vadd.f32 %v1920_v22, %v1856_v19 }
 0x11a   : > { %v1857_v24 = vpop.f32.mrb[12].mxu0 }
 0x11b   : > { %v1921_v25 = vpop.f32.mrb[12].mxu1  ;;  %v1858_v26 = vpop.f32.mrb[13].mxu0 }
 0x11c   : > { %v1859_v27 = vadd.f32 %v1858_v26, %v1857_v24  ;;  %v1922_v28 = vpop.f32.mrb[13].mxu1  ;;  %v1860_v29 = vpop.f32.mrb[14].mxu0 }
 0x11d   : > { %v1923_v30 = vadd.f32 %v1922_v28, %v1921_v25  ;;  %v1924_v31 = vpop.f32.mrb[14].mxu1  ;;  %v1861_v32 = vpop.f32.mrb[15].mxu0 }
 0x11e   : > { %v1862_v33 = vadd.f32 %v1861_v32, %v1860_v29  ;;  %v1925_v34 = vpop.f32.mrb[15].mxu1 }
 0x11f   : > { %v2611_v35 = vadd.f32 %v1923_v30, %v1859_v27  ;;  %v1926_v36 = vadd.f32 %v1925_v34, %v1924_v31 }
 0x121   : > { %v2613_v37 = vadd.f32 %v1926_v36, %v1862_v33 }
 0x122   : > { %v1863_v38 = vpop.f32.mrb[16].mxu0 }
 0x123   : > { %v1927_v39 = vpop.f32.mrb[16].mxu1  ;;  %v1864_v40 = vpop.f32.mrb[17].mxu0 }
 0x124   : > { %v1865_v41 = vadd.f32 %v1864_v40, %v1863_v38  ;;  %v1928_v42 = vpop.f32.mrb[17].mxu1  ;;  %v1866_v43 = vpop.f32.mrb[18].mxu0 }
 0x125   : > { %v1929_v44 = vadd.f32 %v1928_v42, %v1927_v39  ;;  %v1930_v45 = vpop.f32.mrb[18].mxu1  ;;  %v1867_v46 = vpop.f32.mrb[19].mxu0 }
 0x126   : > { %v1868_v47 = vadd.f32 %v1867_v46, %v1866_v43  ;;  %v1931_v48 = vpop.f32.mrb[19].mxu1 }
 0x127   : > { %v2615_v49 = vadd.f32 %v1929_v44, %v1865_v41  ;;  %v1932_v50 = vadd.f32 %v1931_v48, %v1930_v45 }
 0x129   : > { %v2617_v51 = vadd.f32 %v1932_v50, %v1868_v47 }
 0x12a   : > { %v1869_v52 = vpop.f32.mrb[20].mxu0 }
 0x12b   : > { %v1933_v53 = vpop.f32.mrb[20].mxu1  ;;  %v1870_v54 = vpop.f32.mrb[21].mxu0 }
 0x12c   : > { %v1871_v55 = vadd.f32 %v1870_v54, %v1869_v52  ;;  %v1934_v56 = vpop.f32.mrb[21].mxu1  ;;  %v1872_v58 = vpop.f32.mrb[22].mxu0 }
 0x12d   : > { %v1935_v60 = vadd.f32 %v1934_v56, %v1933_v53  ;;  %v1936_v61 = vpop.f32.mrb[22].mxu1  ;;  %v1873_v62 = vpop.f32.mrb[23].mxu0 }
 0x12e   : > { %v1874_v63 = vadd.f32 %v1873_v62, %v1872_v58  ;;  %v1937_v0 = vpop.f32.mrb[23].mxu1 }
 0x12f   : > { %v2619_v1 = vadd.f32 %v1935_v60, %v1871_v55  ;;  %v1938_v2 = vadd.f32 %v1937_v0, %v1936_v61 }
 0x131   : > { %v2621_v3 = vadd.f32 %v1938_v2, %v1874_v63 }
 0x132   : > { %v1875_v4 = vpop.f32.mrb[24].mxu0 }
 0x133   : > { %v1939_v5 = vpop.f32.mrb[24].mxu1  ;;  %v1876_v6 = vpop.f32.mrb[25].mxu0 }
 0x134   : > { %v1877_v8 = vadd.f32 %v1876_v6, %v1875_v4  ;;  %v1940_v10 = vpop.f32.mrb[25].mxu1  ;;  %v1878_v11 = vpop.f32.mrb[26].mxu0 }
 0x135   : > { %v1941_v12 = vadd.f32 %v1940_v10, %v1939_v5  ;;  %v1942_v13 = vpop.f32.mrb[26].mxu1  ;;  %v1879_v14 = vpop.f32.mrb[27].mxu0 }
 0x136   : > { %v1880_v15 = vadd.f32 %v1879_v14, %v1878_v11  ;;  %v1943_v16 = vpop.f32.mrb[27].mxu1 }
 0x137   : > { %v2623_v17 = vadd.f32 %v1941_v12, %v1877_v8  ;;  %v1944_v18 = vadd.f32 %v1943_v16, %v1942_v13 }
 0x139   : > { %v2625_v19 = vadd.f32 %v1944_v18, %v1880_v15 }
 0x13a   : > { %v1881_v20 = vpop.f32.mrb[28].mxu0 }
 0x13b   : > { %v1945_v22 = vpop.f32.mrb[28].mxu1  ;;  %v1882_v24 = vpop.f32.mrb[29].mxu0 }
 0x13c   : > { %v1883_v25 = vadd.f32 %v1882_v24, %v1881_v20  ;;  %v1946_v26 = vpop.f32.mrb[29].mxu1  ;;  %v1884_v27 = vpop.f32.mrb[30].mxu0 }
 0x13d   : > { %v1947_v28 = vadd.f32 %v1946_v26, %v1945_v22  ;;  %v1948_v29 = vpop.f32.mrb[30].mxu1  ;;  %v1885_v30 = vpop.f32.mrb[31].mxu0 }
 0x13e   : > { %v1886_v31 = vadd.f32 %v1885_v30, %v1884_v27  ;;  %v1949_v32 = vpop.f32.mrb[31].mxu1 }
 0x13f   : > { %v2627_v33 = vadd.f32 %v1947_v28, %v1883_v25  ;;  %v1950_v34 = vadd.f32 %v1949_v32, %v1948_v29 }
 0x141   : > { %v2629_v36 = vadd.f32 %v1950_v34, %v1886_v31 }
 0x142   : > { %v1967_v38 = vpop.f32.mrb[32].mxu0 }
 0x143   : > { %v1968_v39 = vpop.f32.mrb[33].mxu0  ;;  %v2043_v40 = vpop.f32.mrb[32].mxu1 }
 0x144   : > { %v1969_v41 = vadd.f32 %v1968_v39, %v1967_v38  ;;  %v1970_v42 = vpop.f32.mrb[34].mxu0  ;;  %v1315_v43 = vpop.f32.mrb[33].mxu1 }
 0x145   : > { %v1971_v44 = vpop.f32.mrb[35].mxu0  ;;  %v2044_v45 = vpop.f32.mrb[34].mxu1 }
 0x146   : > { %v1972_v46 = vadd.f32 %v1971_v44, %v1970_v42  ;;  %v1219_v47 = vadd.f32 %v1969_v41, %v2599_v57  ;;  %v1318_v48 = vpop.f32.mrb[35].mxu1 }
 0x148   : > { %v1316_v50 = vadd.f32 %v1315_v43, %v1219_v47  ;;  %v1222_v52 = vadd.f32 %v1972_v46, %v2601_v59 }
 0x14a   : > { %v1418_v53 = vmul.f32 %v1316_v50, %v1316_v50  ;;  %v1807_v54 = vpack.c.bf16 %v1316_v50, %v1316_v50  ;;  %v1319_v55 = vadd.f32 %v1318_v48, %v1222_v52  ;;  %v1973_v56 = vpop.f32.mrb[36].mxu0  ;;  %v1379_v57 = vsel %vm1378_vm1, %v1316_v50, 0.0 }
 0x14b   : > { %v1974_v58 = vpop.f32.mrb[37].mxu0  ;;  %v2639_v60 = vpop.f32.mrb[36].mxu1 }
 0x14c   : > { %1537 = vst.msk [vmem:[%s2637_s17] sm:$0xf] %vm1536_vm2, %v1807_v54  ;;  %v1380_v59 = vsel %vm1378_vm1, %v1319_v55, 0.0  ;;  %v1419_v61 = vmul.f32 %v1319_v55, %v1319_v55  ;;  %v1808_v62 = vpack.c.bf16 %v1319_v55, %v1319_v55  ;;  %v1976_v63 = vpop.f32.mrb[38].mxu0  ;;  %v1331_v0 = vpop.f32.mrb[37].mxu1  ;;  %v1975_v4 = vadd.f32 %v1974_v58, %v1973_v56 }
 0x14d   : > { %v1381_v2 = vadd.f32 %v1380_v59, %v1379_v57  ;;  %v1977_v5 = vpop.f32.mrb[39].mxu0  ;;  %v2645_v6 = vpop.f32.mrb[38].mxu1  ;;  %v1434_v8 = vsel %vm1378_vm1, %v1418_v53, 0.0 }
 0x14e   : > { %v1435_v10 = vsel %vm1378_vm1, %v1419_v61, 0.0  ;;  %1538 = vst.msk [vmem:[%s2637_s17 + $0x4] sm:$0xf] %vm1536_vm2, %v1808_v62  ;;  %v1978_v11 = vadd.f32 %v1977_v5, %v1976_v63  ;;  %v1334_v12 = vpop.f32.mrb[39].mxu1  ;;  %v1227_v14 = vadd.f32 %v1975_v4, %v2603_v7 }
 0x14f   : > { %v1436_v13 = vadd.f32 %v1435_v10, %v1434_v8 }
 0x150   : > { %v1230_v15 = vadd.f32 %v1978_v11, %v2605_v9  ;;  %v1324_v16 = vadd.f32 %v2043_v40, %v1227_v14 }
 0x152   : > { %v1327_v18 = vadd.f32 %v2044_v45, %v1230_v15  ;;  %v1979_v20 = vpop.f32.mrb[40].mxu0  ;;  %v1382_v22 = vsel %vm1378_vm1, %v1324_v16, 0.0  ;;  %v1420_v24 = vmul.f32 %v1324_v16, %v1324_v16  ;;  %v1809_v25 = vpack.c.bf16 %v1324_v16, %v1324_v16 }
 0x153   : > { %v1980_v26 = vpop.f32.mrb[41].mxu0  ;;  %v2654_v27 = vpop.f32.mrb[40].mxu1  ;;  %v1383_v32 = vadd.f32 %v1382_v22, %v1381_v2 }
 0x154   : > { %v1421_v28 = vmul.f32 %v1327_v18, %v1327_v18  ;;  %v1810_v29 = vpack.c.bf16 %v1327_v18, %v1327_v18  ;;  %v1981_v30 = vadd.f32 %v1980_v26, %v1979_v20  ;;  %v1982_v31 = vpop.f32.mrb[42].mxu0  ;;  %v2656_v7 = vpop.f32.mrb[41].mxu1  ;;  %v1437_v9 = vsel %vm1378_vm1, %v1420_v24, 0.0  ;;  %1539 = vst.msk [vmem:[%s2637_s17 + $0x8] sm:$0xf] %vm1536_vm2, %v1809_v25 }
 0x155   : > { %v1983_v34 = vpop.f32.mrb[43].mxu0  ;;  %v1384_v38 = vsel %vm1378_vm1, %v1327_v18, 0.0  ;;  %v2662_v39 = vpop.f32.mrb[42].mxu1  ;;  %v1438_v43 = vadd.f32 %v1437_v9, %v1436_v13 }
 0x156   : > { %1540 = vst.msk [vmem:[%s2637_s17 + $0xc] sm:$0xf] %vm1536_vm2, %v1810_v29  ;;  %v1984_v40 = vadd.f32 %v1983_v34, %v1982_v31  ;;  %v1235_v41 = vadd.f32 %v1981_v30, %v2607_v21  ;;  %v1385_v42 = vadd.f32 %v1384_v38, %v1383_v32  ;;  %v1350_v44 = vpop.f32.mrb[43].mxu1  ;;  %v1439_v45 = vsel %vm1378_vm1, %v1421_v28, 0.0 }
 0x157   : > { %v1440_v47 = vadd.f32 %v1439_v45, %v1438_v43 }
 0x158   : > { %v1332_v46 = vadd.f32 %v1331_v0, %v1235_v41  ;;  %v1238_v48 = vadd.f32 %v1984_v40, %v2609_v23 }
 0x15a   : > { %v1386_v50 = vsel %vm1378_vm1, %v1332_v46, 0.0  ;;  %v1422_v52 = vmul.f32 %v1332_v46, %v1332_v46  ;;  %v1811_v53 = vpack.c.bf16 %v1332_v46, %v1332_v46  ;;  %v1335_v54 = vadd.f32 %v1334_v12, %v1238_v48  ;;  %v1985_v55 = vpop.f32.mrb[44].mxu0 }
 0x15b   : > { %v1387_v56 = vadd.f32 %v1386_v50, %v1385_v42  ;;  %v1986_v58 = vpop.f32.mrb[45].mxu0  ;;  %v2670_v21 = vpop.f32.mrb[44].mxu1 }
 0x15c   : > { %v1441_v57 = vsel %vm1378_vm1, %v1422_v52, 0.0  ;;  %1541 = vst.msk [vmem:[%s2637_s17 + $0x10] sm:$0xf] %vm1536_vm2, %v1811_v53  ;;  %v1388_v59 = vsel %vm1378_vm1, %v1335_v54, 0.0  ;;  %v1423_v61 = vmul.f32 %v1335_v54, %v1335_v54  ;;  %v1812_v62 = vpack.c.bf16 %v1335_v54, %v1335_v54  ;;  %v1988_v23 = vpop.f32.mrb[46].mxu0  ;;  %v2676_v63 = vpop.f32.mrb[45].mxu1 }
 0x15d   : > { %v1442_v0 = vadd.f32 %v1441_v57, %v1440_v47  ;;  %v1389_v2 = vadd.f32 %v1388_v59, %v1387_v56  ;;  %v1987_v4 = vadd.f32 %v1986_v58, %v1985_v55  ;;  %v1989_v5 = vpop.f32.mrb[47].mxu0  ;;  %v2678_v8 = vpop.f32.mrb[46].mxu1 }
 0x15e   : > { %v1443_v10 = vsel %vm1378_vm1, %v1423_v61, 0.0  ;;  %1542 = vst.msk [vmem:[%s2637_s17 + $0x14] sm:$0xf] %vm1536_vm2, %v1812_v62  ;;  %v1990_v11 = vadd.f32 %v1989_v5, %v1988_v23  ;;  %v2683_v12 = vpop.f32.mrb[47].mxu1 }
 0x15f   : > { %v1444_v13 = vadd.f32 %v1443_v10, %v1442_v0  ;;  %v1243_v14 = vadd.f32 %v1987_v4, %v2611_v35 }
 0x160   : > { %v1246_v15 = vadd.f32 %v1990_v11, %v2613_v37 }
 0x161   : > { %v1340_v16 = vadd.f32 %v2639_v60, %v1243_v14 }
 0x162   : > { %v1343_v18 = vadd.f32 %v2645_v6, %v1246_v15  ;;  %v1991_v20 = vpop.f32.mrb[48].mxu0 }
 0x163   : > { %v1390_v22 = vsel %vm1378_vm1, %v1340_v16, 0.0  ;;  %v1424_v24 = vmul.f32 %v1340_v16, %v1340_v16  ;;  %v1813_v25 = vpack.c.bf16 %v1340_v16, %v1340_v16  ;;  %v1992_v26 = vpop.f32.mrb[49].mxu0 }
 0x164   : > { %v1425_v28 = vmul.f32 %v1343_v18, %v1343_v18  ;;  %v1814_v29 = vpack.c.bf16 %v1343_v18, %v1343_v18  ;;  %v1993_v30 = vadd.f32 %v1992_v26, %v1991_v20  ;;  %v1994_v31 = vpop.f32.mrb[50].mxu0  ;;  %v1391_v32 = vadd.f32 %v1390_v22, %v1389_v2 }
 0x165   : > { %v1445_v35 = vsel %vm1378_vm1, %v1424_v24, 0.0  ;;  %1543 = vst.msk [vmem:[%s2637_s17 + $0x18] sm:$0xf] %vm1536_vm2, %v1813_v25  ;;  %v1995_v37 = vpop.f32.mrb[51].mxu0  ;;  %v1392_v60 = vsel %vm1378_vm1, %v1343_v18, 0.0 }
 0x166   : > { %1544 = vst.msk [vmem:[%s2637_s17 + $0x1c] sm:$0xf] %vm1536_vm2, %v1814_v29  ;;  %v1996_v6 = vadd.f32 %v1995_v37, %v1994_v31  ;;  %v1251_v9 = vadd.f32 %v1993_v30, %v2615_v49  ;;  %v1393_v34 = vadd.f32 %v1392_v60, %v1391_v32  ;;  %v1446_v38 = vadd.f32 %v1445_v35, %v1444_v13 }
 0x167   : > { %v1447_v40 = vsel %vm1378_vm1, %v1425_v28, 0.0 }
 0x168   : > { %v1348_v41 = vadd.f32 %v2656_v7, %v1251_v9  ;;  %v1448_v42 = vadd.f32 %v1447_v40, %v1446_v38  ;;  %v1254_v43 = vadd.f32 %v1996_v6, %v2617_v51 }
 0x16a   : > { %v1394_v45 = vsel %vm1378_vm1, %v1348_v41, 0.0  ;;  %v1426_v46 = vmul.f32 %v1348_v41, %v1348_v41  ;;  %v1815_v47 = vpack.c.bf16 %v1348_v41, %v1348_v41  ;;  %v1351_v48 = vadd.f32 %v1350_v44, %v1254_v43  ;;  %v1997_v50 = vpop.f32.mrb[52].mxu0 }
 0x16b   : > { %v1395_v52 = vadd.f32 %v1394_v45, %v1393_v34  ;;  %v1998_v53 = vpop.f32.mrb[53].mxu0 }
 0x16c   : > { %v1449_v49 = vsel %vm1378_vm1, %v1426_v46, 0.0  ;;  %1545 = vst.msk [vmem:[%s2637_s17 + $0x20] sm:$0xf] %vm1536_vm2, %v1815_v47  ;;  %v1396_v54 = vsel %vm1378_vm1, %v1351_v48, 0.0  ;;  %v1427_v55 = vmul.f32 %v1351_v48, %v1351_v48  ;;  %v1816_v7 = vpack.c.bf16 %v1351_v48, %v1351_v48  ;;  %v2000_v56 = vpop.f32.mrb[54].mxu0 }
 0x16d   : > { %v1450_v58 = vadd.f32 %v1449_v49, %v1448_v42  ;;  %v1397_v51 = vadd.f32 %v1396_v54, %v1395_v52  ;;  %v1999_v57 = vadd.f32 %v1998_v53, %v1997_v50  ;;  %v2001_v59 = vpop.f32.mrb[55].mxu0 }
 0x16e   : > { %v1451_v61 = vsel %vm1378_vm1, %v1427_v55, 0.0  ;;  %1546 = vst.msk [vmem:[%s2637_s17 + $0x24] sm:$0xf] %vm1536_vm2, %v1816_v7  ;;  %v2002_v44 = vadd.f32 %v2001_v59, %v2000_v56 }
 0x16f   : > { %v1452_v62 = vadd.f32 %v1451_v61, %v1450_v58  ;;  %v1259_v23 = vadd.f32 %v1999_v57, %v2619_v1 }
 0x170   : > { %v1262_v0 = vadd.f32 %v2002_v44, %v2621_v3 }
 0x171   : > { %v1356_v2 = vadd.f32 %v2654_v27, %v1259_v23 }
 0x172   : > { %v1359_v4 = vadd.f32 %v2662_v39, %v1262_v0  ;;  %v2003_v5 = vpop.f32.mrb[56].mxu0 }
 0x173   : > { %v1398_v10 = vsel %vm1378_vm1, %v1356_v2, 0.0  ;;  %v1428_v11 = vmul.f32 %v1356_v2, %v1356_v2  ;;  %v1817_v13 = vpack.c.bf16 %v1356_v2, %v1356_v2  ;;  %v2004_v14 = vpop.f32.mrb[57].mxu0 }
 0x174   : > { %v1429_v15 = vmul.f32 %v1359_v4, %v1359_v4  ;;  %v1818_v16 = vpack.c.bf16 %v1359_v4, %v1359_v4  ;;  %v2005_v18 = vadd.f32 %v2004_v14, %v2003_v5  ;;  %v2006_v20 = vpop.f32.mrb[58].mxu0  ;;  %v1399_v22 = vadd.f32 %v1398_v10, %v1397_v51 }
 0x175   : > { %v1453_v1 = vsel %vm1378_vm1, %v1428_v11, 0.0  ;;  %1547 = vst.msk [vmem:[%s2637_s17 + $0x28] sm:$0xf] %vm1536_vm2, %v1817_v13  ;;  %v2007_v3 = vpop.f32.mrb[59].mxu0  ;;  %v1400_v27 = vsel %vm1378_vm1, %v1359_v4, 0.0 }
 0x176   : > { %1548 = vst.msk [vmem:[%s2637_s17 + $0x2c] sm:$0xf] %vm1536_vm2, %v1818_v16  ;;  %v2008_v39 = vadd.f32 %v2007_v3, %v2006_v20  ;;  %v1267_v24 = vadd.f32 %v2005_v18, %v2623_v17  ;;  %v1401_v25 = vadd.f32 %v1400_v27, %v1399_v22  ;;  %v1454_v26 = vadd.f32 %v1453_v1, %v1452_v62 }
 0x177   : > { %v1455_v28 = vsel %vm1378_vm1, %v1429_v15, 0.0 }
 0x178   : > { %v1364_v29 = vadd.f32 %v2676_v63, %v1267_v24  ;;  %v1456_v30 = vadd.f32 %v1455_v28, %v1454_v26  ;;  %v1270_v31 = vadd.f32 %v2008_v39, %v2625_v19 }
 0x17a   : > { %v1402_v32 = vsel %vm1378_vm1, %v1364_v29, 0.0  ;;  %v1430_v35 = vmul.f32 %v1364_v29, %v1364_v29  ;;  %v1819_v37 = vpack.c.bf16 %v1364_v29, %v1364_v29  ;;  %v1367_v60 = vadd.f32 %v2683_v12, %v1270_v31  ;;  %v2009_v6 = vpop.f32.mrb[60].mxu0 }
 0x17b   : > { %v1403_v9 = vadd.f32 %v1402_v32, %v1401_v25  ;;  %v2010_v34 = vpop.f32.mrb[61].mxu0 }
 0x17c   : > { %v1457_v17 = vsel %vm1378_vm1, %v1430_v35, 0.0  ;;  %1549 = vst.msk [vmem:[%s2637_s17 + $0x30] sm:$0xf] %vm1536_vm2, %v1819_v37  ;;  %v1404_v38 = vsel %vm1378_vm1, %v1367_v60, 0.0  ;;  %v1431_v63 = vmul.f32 %v1367_v60, %v1367_v60  ;;  %v1820_v40 = vpack.c.bf16 %v1367_v60, %v1367_v60  ;;  %v2012_v41 = vpop.f32.mrb[62].mxu0 }
 0x17d   : > { %v1458_v19 = vadd.f32 %v1457_v17, %v1456_v30  ;;  %v1405_v42 = vadd.f32 %v1404_v38, %v1403_v9  ;;  %v2011_v43 = vadd.f32 %v2010_v34, %v2009_v6  ;;  %v2013_v45 = vpop.f32.mrb[63].mxu0 }
 0x17e   : > { %v1459_v46 = vsel %vm1378_vm1, %v1431_v63, 0.0  ;;  %1550 = vst.msk [vmem:[%s2637_s17 + $0x34] sm:$0xf] %vm1536_vm2, %v1820_v40  ;;  %v2014_v12 = vadd.f32 %v2013_v45, %v2012_v41 }
 0x17f   : > { %v1460_v47 = vadd.f32 %v1459_v46, %v1458_v19  ;;  %v1275_v48 = vadd.f32 %v2011_v43, %v2627_v33 }
 0x180   : > { %v1278_v50 = vadd.f32 %v2014_v12, %v2629_v36 }
 0x181   : > { %v1372_v52 = vadd.f32 %v2670_v21, %v1275_v48 }
 0x182   : > { %v1375_v53 = vadd.f32 %v2678_v8, %v1278_v50 }
 0x183   : > { %v1406_v49 = vsel %vm1378_vm1, %v1372_v52, 0.0  ;;  %v1432_v54 = vmul.f32 %v1372_v52, %v1372_v52  ;;  %v1821_v55 = vpack.c.bf16 %v1372_v52, %v1372_v52 }
 0x184   : > { %v1407_v7 = vadd.f32 %v1406_v49, %v1405_v42  ;;  %v1408_v56 = vsel %vm1378_vm1, %v1375_v53, 0.0  ;;  %v1433_v58 = vmul.f32 %v1375_v53, %v1375_v53  ;;  %v1822_v51 = vpack.c.bf16 %v1375_v53, %v1375_v53 }
 0x185   : > { %v1461_v57 = vsel %vm1378_vm1, %v1432_v54, 0.0  ;;  %1551 = vst.msk [vmem:[%s2637_s17 + $0x38] sm:$0xf] %vm1536_vm2, %v1821_v55 }
 0x186   : > { %v1462_v33 = vadd.f32 %v1461_v57, %v1460_v47  ;;  %v1409_v36 = vadd.f32 %v1408_v56, %v1407_v7  ;;  %v1463_v21 = vsel %vm1378_vm1, %v1433_v58, 0.0  ;;  %1552 = vst.msk [vmem:[%s2637_s17 + $0x3c] sm:$0xf] %vm1536_vm2, %v1822_v51 }
 0x188   : > { %v1410_v8 = vrot.slane %v1409_v36, 4  ;;  %v1464_v59 = vadd.f32 %v1463_v21, %v1462_v33 }
 0x18a   : > { %v1411_v61 = vadd.f32 %v1410_v8, %v1409_v36  ;;  %v1465_v44 = vrot.slane %v1464_v59, 4 }
 0x18c   : > { %v1412_v62 = vrot.slane %v1411_v61, 2  ;;  %v1466_v23 = vadd.f32 %v1465_v44, %v1464_v59 }
 0x18e   : > { %v1413_v0 = vadd.f32 %v1412_v62, %v1411_v61  ;;  %v1467_v2 = vrot.slane %v1466_v23, 2 }
 0x190   : > { %v1414_v4 = vrot.slane %v1413_v0, 1  ;;  %v1468_v5 = vadd.f32 %v1467_v2, %v1466_v23 }
 0x192   : > { %v1415_v10 = vadd.f32 %v1414_v4, %v1413_v0  ;;  %v1469_v11 = vrot.slane %v1468_v5, 1 }
 0x194   : > { %1417 = vst.msk [vmem:[%s174_s24] sm:$0x1] %vm1416_vm3, %v1415_v10  ;;  %v1470_v13 = vadd.f32 %v1469_v11, %v1468_v5 }
 0x196   : > { %1471 = vst.msk [vmem:[%s174_s24 + $0x1] sm:$0x1] %vm1416_vm3, %v1470_v13 }
 0x197   : > { %2244 = shalt.err (!%p2241_p3)
}
 0x198   : > { %s2245_s6 = scalar_lea.hbm %s2749_s28, 32  ;;  %s2249_s10 = scalar_lea.hbm %s2794_s3, 64 }
 0x199   : > { %p2246_p4 = scmp.ne.s32.totalorder %s2749_s28, %s2245_s6  ;;  %p2250_p9 = scmp.lt.u32.totalorder %s2749_s28, %s2794_s3 }
 0x19a   : > { %p2251_p10 = scmp.lt.u32.totalorder %s2249_s10, %s2245_s6  ;;  %p2253_p12 = scmp.lt.u32.totalorder %s2245_s6, %s2749_s28 }
 0x19b   : > { %p2247_p7 = pnand %p2246_p4, %p2354_p5 }
 0x19c   : > { %p2252_p11 = por %p2251_p10, %p2250_p9 }
 0x19d   : > { %p2248_p8 = pneg %p2247_p7 }
 0x19e   : > { %p2254_p13 = por %p2253_p12, %p2252_p11 }
 0x1a0   : > { %p2255_p0 = pnand %p2254_p13, %p2248_p8 }
 0x1a2   : > { %2258 = shalt.err (!%p2255_p0)
}
 0x1a3   : > { %2058 = dma.vmem_to_hbm [thread:$0]  (%p2354_p5), %s2751_s25, 32, %s2749_s28, %s1559_s29  }
 0x1a4 PF: > { %p2064_p1 = scmp.ge.s32.totalorder %s2293_s15, 2  ;;  %s1596_s9 = sand.u32 1, %s2281_s12  }
 0x1a5   : > { %s1597_s19 = scalar_lea.sflag [#allocation3], %s1596_s9 }
 0x1a6   : > { %p2061_p2 = pnand %p2064_p1, %p2358_p6 }
 0x1a8   : > { %2276 = dma.done.wait (!%p2061_p2), %s1597_s19, 32  }
 0x1a9   : > { %2278 = vsyncadd (!%p2061_p2), %s1597_s19, 4294967264  ;;  %p14_p3 = scmp.ge.s32.totalorder %s2341_s18, 4   ;;  %s2797_s12 = smov %s2285_s13 }
 0x1aa   : > { %s2798_s13 = smov %s2289_s14  ;;  %s2799_s14 = smov %s2352_s21 }
 0x1ab   : > { %s2800_s15 = smov %s2341_s18  ;;  %16 = sbr.rel (!%p14_p3) target bundleno = 3 (0x3), region = 75 }
 0x1b2   :  { %1602 = vsyncpa [#allocation3], 1 }
 0x1b3   :  { %1604 = vsyncpa [#allocation3 + $0x1], 1 }

</bundles_post_ra>
